<compile_context>
chip_gen: v5e
topology: v5e:2x2
jax: 0.10.0
libtpu: 0.0.40
codegen_flags: <defaults>
</compile_context>

<pallas_src>
import functools
import math

import jax
import jax.numpy as jnp
from jax.experimental import pallas as pl
from jax.experimental.pallas import tpu as pltpu


# -----------------------------------------------------------------------------
# VMEM budgeting (generation aware: v5e/v6e = 128 MiB physical, v7x = 64 MiB)
# -----------------------------------------------------------------------------
def _vmem_limit_bytes():
    cap = 128 * 1024 * 1024
    try:
        info = pltpu.get_tpu_info()
        cap = int(getattr(info, "vmem_capacity_bytes", cap) or cap)
    except Exception:
        pass
    # ~48 MiB scoped ceiling on v7x, 96 MiB on v5e/v6e.
    return min((cap * 3) // 4, 96 * 1024 * 1024)


def _conv_vmem_estimate(tri, wd, cin, nt, fuse_k, in_bytes, out_bytes, w_bufs):
    """Rough per-step VMEM working set for the conv kernel (bytes)."""
    m = tri * wd
    body = 2 * tri * (wd + 2) * cin * in_bytes          # double-buffered body tile
    halo = 2 * 2 * (wd + 2) * cin * in_bytes            # double-buffered halo tile
    wblk = w_bufs * 9 * cin * nt * in_bytes              # packed weight block
    bias = 2 * nt * 4
    outb = 2 * m * nt * out_bytes                        # double-buffered output tile
    stitch = (tri + 2) * (wd + 2) * cin * in_bytes       # body+halo concat temp
    acc = m * nt * 4                                     # f32 accumulator
    tmp = m * (9 * cin if fuse_k else cin) * in_bytes    # im2col / single-tap temp
    return body + halo + wblk + bias + outb + stitch + acc + tmp


def _pick_n_tile(cin, cout, in_bytes):
    """Tile N = 4*Cout only once the packed weight exceeds a few MB."""
    n_full = 4 * cout
    if n_full <= 512 or 9 * cin * n_full * in_bytes <= 4 * 1024 * 1024:
        return n_full
    for nt in (512, 256, 128):
        if n_full % nt == 0:
            return nt
    return n_full


def _pick_row_tile_conv(h, wd, cin, nt, fuse_k, in_bytes, out_bytes, w_bufs,
                        budget):
    cands = [t for t in range(2, h + 1, 2) if h % t == 0 and (t * wd) % 8 == 0]
    fits = [t for t in cands
            if _conv_vmem_estimate(t, wd, cin, nt, fuse_k, in_bytes, out_bytes,
                                   w_bufs) <= budget]
    if not fits:
        fits = cands[:1]                 # smallest candidate; best effort
    def score(t):
        m = t * wd
        return (h // t >= 2,             # >=2 row steps -> both v7x cores get work
                m % 256 == 0,            # full 256-wide MXU passes (v6e/v7x)
                m >= 1024,
                t)
    return max(fits, key=score)


def _pick_row_tile_nearest(h, wd, c, esz, budget):
    cands = [t for t in range(2, h + 1, 2) if h % t == 0 and (t * wd) % 8 == 0]
    def est(t):
        m = t * wd
        return 2 * m * c * esz + 3 * m * 4 * c * esz
    fits = [t for t in cands if est(t) <= budget] or cands[:1]
    return max(fits, key=lambda t: (h // t >= 2, t))


# -----------------------------------------------------------------------------
# Kernels
# -----------------------------------------------------------------------------
def _upsample_conv_kernel(body_ref, halo_ref, w_ref, b_ref, o_ref, *,
                          tri, w_cols, cin, fuse_k):
    """Fused nearest-2x-upsample + 3x3 conv for one (batch, N-tile, row-tile).

    body_ref: (1, TRI, W+2, C)   zero-padded-x rows [t*TRI, t*TRI+TRI)
    halo_ref: (1, 2,   W+2, C)   zero-padded-x rows [(t+1)*TRI, (t+1)*TRI+2)
    w_ref:    (9*C, NT)          sub-pixel-collapsed weight slab (bf16)
    b_ref:    (1, NT)            bias slab (f32), parity-tiled
    o_ref:    (1, TRI*W, NT)     parity-packed output tile
    """
    m = tri * w_cols
    # Stitch the 2-row bottom halo onto the body (tile-sized VMEM copy).
    xt = jnp.concatenate([body_ref[0], halo_ref[0]], axis=0)   # (TRI+2, W+2, C)

    if fuse_k:
        # Small C: one deep contraction, K = 9*C (im2col temp stays small).
        taps = [xt[oy:oy + tri, ox:ox + w_cols, :]
                for oy in range(3) for ox in range(3)]
        cols = jnp.concatenate(taps, axis=-1).reshape(m, 9 * cin)
        acc = jnp.dot(cols, w_ref[...], preferred_element_type=jnp.float32)
    else:
        # Large C: nine accumulating dots (K = C) -> no (M, 9C) VMEM temp.
        acc = None
        tap = 0
        for oy in range(3):
            for ox in range(3):
                lhs = xt[oy:oy + tri, ox:ox + w_cols, :].reshape(m, cin)
                rhs = w_ref[tap * cin:(tap + 1) * cin, :]
                part = jnp.dot(lhs, rhs, preferred_element_type=jnp.float32)
                acc = part if acc is None else acc + part
                tap += 1

    o_ref[0] = (acc + b_ref[...]).astype(o_ref.dtype)


def _nearest_kernel(x_ref, o_ref, *, tri, w_cols, cin):
    """Pure nearest 2x upsample (with_conv=False), parity-packed output."""
    flat = x_ref[0].reshape(tri * w_cols, cin)                  # (TRI*W, C)
    o_ref[0] = jnp.concatenate([flat, flat, flat, flat], axis=-1)


# -----------------------------------------------------------------------------
# Weight packing: nearest-upsample + 3x3 conv == per-parity conv on original x
# -----------------------------------------------------------------------------
def _pack_subpixel_weight(w):
    """(Cout, Cin, 3, 3) torch-layout conv weight -> (9*Cin, 4*Cout).

    K axis ordered (oy, ox, ci) over original-resolution offsets oy,ox in
    {-1,0,+1}; N axis ordered (pi, pj, co) over the 2x2 output parities.
    """
    cout, cin, _, _ = w.shape
    # m[p, o, d] = 1 iff floor((p + d - 1) / 2) == o - 1  (p=parity, d=conv tap)
    m = jnp.array([[[1., 0., 0.], [0., 1., 1.], [0., 0., 0.]],
                   [[0., 0., 0.], [1., 1., 0.], [0., 0., 1.]]], jnp.float32)
    w_eff = jnp.einsum('pad,qbe,oide->abipqo', m, m, w.astype(jnp.float32))
    return w_eff.reshape(9 * cin, 4 * cout)


# -----------------------------------------------------------------------------
# Public wrapper (NCHW in; NCHW out by default — like the PyTorch module)
# -----------------------------------------------------------------------------
def upsample_apply(x_nchw, w=None, b=None, *, with_conv=True, row_tile=None,
                   n_tile=None, k_mode="auto", compute_dtype=jnp.bfloat16,
                   out_dtype=None, data_format="NCHW"):
    n, c, h, wd = x_nchw.shape
    assert h % 2 == 0, "even spatial size required (see TODO at top)"
    x_nhwc = jnp.transpose(x_nchw, (0, 2, 3, 1))                # (N, H, W, C)
    out_dtype = x_nchw.dtype if out_dtype is None else out_dtype

    limit = _vmem_limit_bytes()
    budget = int(limit * 0.85)

    if with_conv:
        cout = w.shape[0]
        in_bytes = jnp.dtype(compute_dtype).itemsize
        out_bytes = jnp.dtype(out_dtype).itemsize

        nt = _pick_n_tile(c, cout, in_bytes) if n_tile is None else n_tile
        assert (4 * cout) % nt == 0 and nt % 128 == 0
        n_nt = (4 * cout) // nt

        fuse_k = (c < 128) if k_mode == "auto" else (k_mode == "fused")
        # Constant index map -> double-buffering the weight/bias is pure waste.
        single_buf_w = (n_nt == 1)
        w_bufs = 1 if single_buf_w else 2

        tri = (_pick_row_tile_conv(h, wd, c, nt, fuse_k, in_bytes, out_bytes,
                                   w_bufs, budget)
               if row_tile is None else row_tile)
        assert tri % 2 == 0 and h % tri == 0, "row_tile must be even, divide H"
        assert (tri * wd) % 8 == 0, "row_tile * W must be a multiple of 8"

        w_eff = _pack_subpixel_weight(w).astype(compute_dtype)  # (9C, 4Cout)
        b4 = jnp.tile(b.astype(jnp.float32), (4,)).reshape(1, 4 * cout)
        # 1-pixel zero pad at ORIGINAL resolution reproduces the conv padding=1
        # at upsampled resolution exactly; bf16 cast halves the input DMA.
        xp = jnp.pad(x_nhwc, ((0, 0), (1, 1), (1, 1), (0, 0))).astype(compute_dtype)

        w_mode = dict(pipeline_mode=pl.Buffered(1)) if single_buf_w else {}
        grid = (n, n_nt, h // tri)        # row axis innermost -> weight resident
        kern = functools.partial(_upsample_conv_kernel, tri=tri, w_cols=wd,
                                 cin=c, fuse_k=fuse_k)
        packed = pl.pallas_call(
            kern,
            out_shape=jax.ShapeDtypeStruct((n, h * wd, 4 * cout), out_dtype),
            grid=grid,
            in_specs=[
                # body rows [t*TRI, t*TRI+TRI) of the padded input
                pl.BlockSpec((1, tri, wd + 2, c), lambda i, j, t: (i, t, 0, 0)),
                # bottom halo rows [(t+1)*TRI, (t+1)*TRI+2) (same array, second
                # non-overlapping BlockSpec -> keeps auto pipelining)
                pl.BlockSpec((1, 2, wd + 2, c),
                             lambda i, j, t, _s=tri // 2: (i, (t + 1) * _s, 0, 0)),
                pl.BlockSpec((9 * c, nt), lambda i, j, t: (0, j), **w_mode),
                pl.BlockSpec((1, nt), lambda i, j, t: (0, j), **w_mode),
            ],
            out_specs=pl.BlockSpec((1, tri * wd, nt), lambda i, j, t: (i, t, j)),
            compiler_params=pltpu.CompilerParams(
                dimension_semantics=("parallel", "parallel", "parallel"),
                vmem_limit_bytes=limit),
        )(xp, xp, w_eff, b4)
    else:
        cout = c
        esz = jnp.dtype(x_nhwc.dtype).itemsize
        tri = (_pick_row_tile_nearest(h, wd, c, esz, budget)
               if row_tile is None else row_tile)
        assert h % tri == 0 and (tri * wd) % 8 == 0
        kern = functools.partial(_nearest_kernel, tri=tri, w_cols=wd, cin=c)
        packed = pl.pallas_call(
            kern,
            out_shape=jax.ShapeDtypeStruct((n, h * wd, 4 * c), x_nhwc.dtype),
            grid=(n, h // tri),
            in_specs=[pl.BlockSpec((1, tri, wd, c), lambda i, t: (i, t, 0, 0))],
            out_specs=pl.BlockSpec((1, tri * wd, 4 * c),
                                   lambda i, t: (i, t, 0)),
            compiler_params=pltpu.CompilerParams(
                dimension_semantics=("parallel", "parallel"),
                vmem_limit_bytes=limit),
        )(x_nhwc)

    # Depth-to-space + layout glue: reshape is free; exactly ONE relayout pass
    # remains (it fuses depth-to-space with the unavoidable NHWC->NCHW move).
    out6 = packed.reshape(n, h, wd, 2, 2, cout)
    if data_format == "NHWC":
        # Cheaper permute (channel stays the minor dim); no NCHW relayout pass.
        return jnp.transpose(out6, (0, 1, 3, 2, 4, 5)).reshape(n, 2 * h, 2 * wd,
                                                               cout)
    out = jnp.transpose(out6, (0, 5, 1, 3, 2, 4)).reshape(n, cout, 2 * h, 2 * wd)
    return out


# -----------------------------------------------------------------------------
# Plain-JAX reference (mirrors the PyTorch forward) for correctness checks
# -----------------------------------------------------------------------------
def upsample_ref(x_nchw, w=None, b=None, *, with_conv=True):
    u = jnp.repeat(jnp.repeat(x_nchw, 2, axis=2), 2, axis=3)    # nearest 2x
    if not with_conv:
        return u
    out = jax.lax.conv_general_dilated(
        u, w, window_strides=(1, 1), padding=((1, 1), (1, 1)),
        dimension_numbers=('NCHW', 'OIHW', 'NCHW'),
        precision=jax.lax.Precision.HIGHEST)
    return out + b[None, :, None, None]


if __name__ == "__main__":
    keys = jax.random.split(jax.random.PRNGKey(0), 6)

    # --- config 1: small channels -> fused K=9C path, single-buffered weights
    n, c, h, wd = 2, 32, 16, 16
    x = jax.random.normal(keys[0], (n, c, h, wd), jnp.float32)
    w = jax.random.normal(keys[1], (c, c, 3, 3), jnp.float32) / math.sqrt(9 * c)
    b = 0.1 * jax.random.normal(keys[2], (c,), jnp.float32)

    run = jax.jit(functools.partial(upsample_apply, with_conv=True, row_tile=4))
    out = run(x, w, b)
    jax.block_until_ready(out)
    ref = upsample_ref(x, w, b, with_conv=True)
    assert out.shape == ref.shape, out.shape
    err = float(jnp.max(jnp.abs(out - ref)))
    assert math.isfinite(err) and err < 1e-1, err   # bf16-operand tolerance

    # --- config 2: per-tap accumulating dots + N-tiled weights (3-axis grid)
    n2, c2, h2, wd2 = 1, 64, 8, 16
    x2 = jax.random.normal(keys[3], (n2, c2, h2, wd2), jnp.float32)
    w2 = jax.random.normal(keys[4], (c2, c2, 3, 3), jnp.float32) / math.sqrt(9 * c2)
    b2 = 0.1 * jax.random.normal(keys[5], (c2,), jnp.float32)
    run2 = jax.jit(functools.partial(upsample_apply, with_conv=True,
                                     k_mode="per_tap", n_tile=128))
    out2 = run2(x2, w2, b2)
    jax.block_until_ready(out2)
    ref2 = upsample_ref(x2, w2, b2, with_conv=True)
    err2 = float(jnp.max(jnp.abs(out2 - ref2)))
    assert math.isfinite(err2) and err2 < 1e-1, err2

    # --- NHWC output option (skips the NCHW relayout pass) -------------------
    run3 = jax.jit(functools.partial(upsample_apply, with_conv=True, row_tile=4,
                                     data_format="NHWC"))
    out3 = run3(x, w, b)
    jax.block_until_ready(out3)
    err3 = float(jnp.max(jnp.abs(out3 - jnp.transpose(ref, (0, 2, 3, 1)))))
    assert err3 < 1e-1, err3

    # --- with_conv=False: pure nearest upsample, exact ------------------------
    run4 = jax.jit(functools.partial(upsample_apply, with_conv=False, row_tile=8))
    out4 = run4(x)
    jax.block_until_ready(out4)
    ref4 = upsample_ref(x, with_conv=False)
    assert out4.shape == ref4.shape
    assert bool(jnp.array_equal(out4, ref4))

    print("KERNEL_OK")
</pallas_src>

<mosaic_0001>
module attributes {stable_mosaic.version = 11 : i64} {
  func.func @_upsample_conv_kernel(%arg0: i32, %arg1: i32, %arg2: i32, %arg3: memref<1x4x18x32xbf16, #tpu.memory_space<vmem>>, %arg4: memref<1x2x18x32xbf16, #tpu.memory_space<vmem>>, %arg5: memref<288x128xbf16, #tpu.memory_space<vmem>>, %arg6: memref<1x128xf32, #tpu.memory_space<vmem>>, %arg7: memref<1x64x128xf32, #tpu.memory_space<vmem>>) attributes {dimension_semantics = [#tpu.dimension_semantics<parallel>, #tpu.dimension_semantics<parallel>, #tpu.dimension_semantics<parallel>], iteration_bounds = array<i64: 2, 1, 4>, scalar_prefetch = 0 : i64, scratch_operands = 0 : i64, tpu.core_type = #tpu.core_type<tc>, window_params = [{transform_indices = @transform_0, window_bounds = array<i64: 1, 4, 18, 32>}, {transform_indices = @transform_1, window_bounds = array<i64: 1, 2, 18, 32>}, {pipeline_mode = #tpu.pipeline_mode<synchronous>, transform_indices = @transform_2, window_bounds = array<i64: 288, 128>}, {pipeline_mode = #tpu.pipeline_mode<synchronous>, transform_indices = @transform_3, window_bounds = array<i64: 1, 128>}, {transform_indices = @transform_4, window_bounds = array<i64: 1, 64, 128>}]} {
    %c0 = arith.constant 0 : index
    %c0_0 = arith.constant 0 : index
    %c0_1 = arith.constant 0 : index
    %c0_2 = arith.constant 0 : index
    %0 = vector.load %arg3[%c0, %c0_0, %c0_1, %c0_2] : memref<1x4x18x32xbf16, #tpu.memory_space<vmem>>, vector<1x4x18x32xbf16>
    %1 = vector.shape_cast %0 : vector<1x4x18x32xbf16> to vector<4x18x32xbf16>
    %c0_3 = arith.constant 0 : index
    %c0_4 = arith.constant 0 : index
    %c0_5 = arith.constant 0 : index
    %c0_6 = arith.constant 0 : index
    %2 = vector.load %arg4[%c0_3, %c0_4, %c0_5, %c0_6] : memref<1x2x18x32xbf16, #tpu.memory_space<vmem>>, vector<1x2x18x32xbf16>
    %3 = vector.shape_cast %2 : vector<1x2x18x32xbf16> to vector<2x18x32xbf16>
    %4 = tpu.concatenate %1, %3 in 0 : vector<4x18x32xbf16>, vector<2x18x32xbf16> -> vector<6x18x32xbf16>
    %5 = vector.extract_strided_slice %4 {offsets = [0, 0, 0], sizes = [4, 16, 32], strides = [1, 1, 1]} : vector<6x18x32xbf16> to vector<4x16x32xbf16>
    %6 = vector.extract_strided_slice %4 {offsets = [0, 1, 0], sizes = [4, 16, 32], strides = [1, 1, 1]} : vector<6x18x32xbf16> to vector<4x16x32xbf16>
    %7 = vector.extract_strided_slice %4 {offsets = [0, 2, 0], sizes = [4, 16, 32], strides = [1, 1, 1]} : vector<6x18x32xbf16> to vector<4x16x32xbf16>
    %8 = vector.extract_strided_slice %4 {offsets = [1, 0, 0], sizes = [4, 16, 32], strides = [1, 1, 1]} : vector<6x18x32xbf16> to vector<4x16x32xbf16>
    %9 = vector.extract_strided_slice %4 {offsets = [1, 1, 0], sizes = [4, 16, 32], strides = [1, 1, 1]} : vector<6x18x32xbf16> to vector<4x16x32xbf16>
    %10 = vector.extract_strided_slice %4 {offsets = [1, 2, 0], sizes = [4, 16, 32], strides = [1, 1, 1]} : vector<6x18x32xbf16> to vector<4x16x32xbf16>
    %11 = vector.extract_strided_slice %4 {offsets = [2, 0, 0], sizes = [4, 16, 32], strides = [1, 1, 1]} : vector<6x18x32xbf16> to vector<4x16x32xbf16>
    %12 = vector.extract_strided_slice %4 {offsets = [2, 1, 0], sizes = [4, 16, 32], strides = [1, 1, 1]} : vector<6x18x32xbf16> to vector<4x16x32xbf16>
    %13 = vector.extract_strided_slice %4 {offsets = [2, 2, 0], sizes = [4, 16, 32], strides = [1, 1, 1]} : vector<6x18x32xbf16> to vector<4x16x32xbf16>
    %14 = tpu.concatenate %5, %6, %7, %8, %9, %10, %11, %12, %13 in 2 : vector<4x16x32xbf16>, vector<4x16x32xbf16>, vector<4x16x32xbf16>, vector<4x16x32xbf16>, vector<4x16x32xbf16>, vector<4x16x32xbf16>, vector<4x16x32xbf16>, vector<4x16x32xbf16>, vector<4x16x32xbf16> -> vector<4x16x288xbf16>
    %15 = vector.shape_cast %14 : vector<4x16x288xbf16> to vector<64x288xbf16>
    %c0_7 = arith.constant 0 : index
    %c0_8 = arith.constant 0 : index
    %16 = vector.load %arg5[%c0_7, %c0_8] : memref<288x128xbf16, #tpu.memory_space<vmem>>, vector<288x128xbf16>
    %cst = arith.constant dense<0.000000e+00> : vector<64x128xf32>
    %17 = tpu.matmul %15, %16, %cst {dimension_numbers = #tpu.dot_dimension_numbers<[1], [0], [0], [1], [0, 0, 1, 1], [], []>} : vector<64x288xbf16>, vector<288x128xbf16>, vector<64x128xf32> -> vector<64x128xf32>
    %c0_9 = arith.constant 0 : index
    %c0_10 = arith.constant 0 : index
    %18 = vector.load %arg6[%c0_9, %c0_10] : memref<1x128xf32, #tpu.memory_space<vmem>>, vector<1x128xf32>
    %19 = vector.broadcast %18 : vector<1x128xf32> to vector<64x128xf32>
    %20 = arith.addf %17, %19 : vector<64x128xf32>
    %c0_11 = arith.constant 0 : index
    %c0_12 = arith.constant 0 : index
    %c0_13 = arith.constant 0 : index
    %21 = vector.load %arg7[%c0_11, %c0_12, %c0_13] : memref<1x64x128xf32, #tpu.memory_space<vmem>>, vector<1x64x128xf32>
    %22 = vector.shape_cast %21 : vector<1x64x128xf32> to vector<64x128xf32>
    %23 = vector.shape_cast %20 : vector<64x128xf32> to vector<1x64x128xf32>
    tpu.vector_store %arg7[%c0_11, %c0_12, %c0_13], %23 {strides = array<i32>} : memref<1x64x128xf32, #tpu.memory_space<vmem>>, vector<1x64x128xf32>,
    return
  }
  func.func @transform_0(%arg0: i32, %arg1: i32, %arg2: i32) -> (i32, i32, i32, i32) {
    %c0_i32 = arith.constant 0 : i32
    %c0_i32_0 = arith.constant 0 : i32
    %c0_i32_1 = arith.constant 0 : i32
    return %arg0, %arg2, %c0_i32, %c0_i32_0 : i32, i32, i32, i32
  }
  func.func @transform_1(%arg0: i32, %arg1: i32, %arg2: i32) -> (i32, i32, i32, i32) {
    %c1_i32 = arith.constant 1 : i32
    %0 = arith.addi %arg2, %c1_i32 : i32
    %c2_i32 = arith.constant 2 : i32
    %1 = arith.muli %0, %c2_i32 : i32
    %c0_i32 = arith.constant 0 : i32
    %c0_i32_0 = arith.constant 0 : i32
    %c0_i32_1 = arith.constant 0 : i32
    return %arg0, %1, %c0_i32, %c0_i32_0 : i32, i32, i32, i32
  }
  func.func @transform_2(%arg0: i32, %arg1: i32, %arg2: i32) -> (i32, i32) {
    %c0_i32 = arith.constant 0 : i32
    %c0_i32_0 = arith.constant 0 : i32
    return %c0_i32, %arg1 : i32, i32
  }
  func.func @transform_3(%arg0: i32, %arg1: i32, %arg2: i32) -> (i32, i32) {
    %c0_i32 = arith.constant 0 : i32
    %c0_i32_0 = arith.constant 0 : i32
    return %c0_i32, %arg1 : i32, i32
  }
  func.func @transform_4(%arg0: i32, %arg1: i32, %arg2: i32) -> (i32, i32, i32) {
    %c0_i32 = arith.constant 0 : i32
    return %arg0, %arg2, %arg1 : i32, i32, i32
  }
}

</mosaic_0001>

<bundles_post_ra>
// kernel: tile.9
= control target key start
LH: loop header
LB: loop body
LE: loop exit
PB: predicated region body
PF: predicated region fallthrough
CT: control target
= control target key end

     0   :  { %s37_s8 = smov 32   ;;  %s38_s9 = smov 64   ;;  %vm7_vm0 = vcmask 261120   ;;  %vm13_vm1 = vcmask 1048320   ;;  %vm19_vm2 = vcmask 785920   ;;  %vm25_vm3 = vcmask 523520   ;;  %s55_s0 = inlined_call_operand.vmem [shape: f32[4,32], index: 0, kind: input, shape index: {}]   ;;  %s56_s1 = inlined_call_operand.vmem [shape: f32[1,128], index: 1, kind: output, shape index: {}]  }
   0x1   :  { %v4_v0 = vld [vmem:[%s55_s0] sm:$0xf]  ;;  %s36_s0 = smov 96  }
   0x2   :  { %5 = vst [vmem:[#allocation1] sm:$0xf] %v4_v0 }
   0x9   :  { %v10_v1 = vld [vmem:[#allocation1 + $0x3] sm:$0x1]   ;;  %v22_v2 = vld [vmem:[#allocation1 + $0x1] sm:$0x1]   ;;  %v16_v3 = vld [vmem:[#allocation1 + $0x2] sm:$0x1]  }
   0xa   :  { %11 = vrot.lane.b32.xlu0 %v10_v1, %s36_s0  ;;  %23 = vrot.lane.b32.xlu1 %v22_v2, %s37_s8  ;;  %v6_v4 = vld [vmem:[#allocation1] sm:$0x1]  }
   0xb   :  { %8 = vst.msk [vmem:[#allocation0] sm:$0x1] %vm7_vm0, %v6_v4  }
  0x12   :  { %17 = vrot.lane.b32.xlu0 %v16_v3, %s38_s9 }
  0x7c   :  { %v12_v5 = vpop.permute.xlu0 %11   ;;  %v24_v6 = vpop.permute.xlu1 %23  }
  0x7d   :  { %14 = vst.msk [vmem:[#allocation0] sm:$0x1] %vm13_vm1, %v12_v5  }
  0x84   :  { %v18_v7 = vpop.permute.xlu0 %17  }
  0x85   :  { %20 = vst.msk [vmem:[#allocation0] sm:$0x1] %vm19_vm2, %v18_v7  }
  0x86   :  { %26 = vst.msk [vmem:[#allocation0] sm:$0x1] %vm25_vm3, %v24_v6  }
  0x8d   :  { %v29_v8 = vld [vmem:[#allocation0] sm:$0x1] }
  0x8e   :  { %32 = vst [vmem:[%s56_s1] sm:$0x1] %v29_v8 }

// kernel: tile.8
= control target key start
LH: loop header
LB: loop body
LE: loop exit
PB: predicated region body
PF: predicated region fallthrough
CT: control target
= control target key end

     0   :  { %s22_s0 = inlined_call_operand.vmem [shape: f32[32], index: 0, kind: input, shape index: {}]   ;;  %s23_s1 = inlined_call_operand.vmem [shape: f32[4,32], index: 1, kind: output, shape index: {}]  }
   0x1   :  { %v4_v0 = vld [vmem:[%s22_s0] ss:$0 sm:$0xff] }
   0x2   :  { %5 = vst [vmem:[%s23_s1] sm:$0xf] %v4_v0 }

// kernel: upsample_apply.1
= control target key start
LH: loop header
LB: loop body
LE: loop exit
PB: predicated region body
PF: predicated region fallthrough
CT: control target
= control target key end

     0   :  { %s1326_s15 = smov 0   ;;  %s1328_s16 = smov 0   ;;  %s1633_s0 = inlined_call_operand.vmem [shape: bf16[2,18,18,32], index: 0, kind: input, shape index: {}, may-alias: {0,1}]   ;;  %s1634_s1 = inlined_call_operand.vmem [shape: bf16[2,18,18,32], index: 1, kind: input, shape index: {}, may-alias: {0,1}]   ;;  %s1635_s2 = inlined_call_operand.vmem [shape: bf16[288,128], index: 2, kind: input, shape index: {}]   ;;  %s1636_s3 = inlined_call_operand.vmem [shape: f32[1,128], index: 3, kind: input, shape index: {}]   ;;  %s1637_s4 = inlined_call_operand.vmem [shape: f32[2,256,128], index: 4, kind: output, shape index: {}]  }
   0x1   :  { %s1330_s17 = smov 0   ;;  %s1332_s18 = smov 0  }
   0x2   :  { %s1334_s19 = smov 0  }
   0x3 LB: > { %s26_s20 = sadd.s32 1, %s1288_s17  ;;  %s33_s21 = sadd.s32 1, %s1292_s18  ;;  %s1296_s19 = sphi %s1334_s19, %s14_s19   ;;  %s1292_s18 = sphi %s1332_s18, %s1642_s18   ;;  %s1288_s17 = sphi %s1330_s17, %s1641_s17   ;;  %s1284_s16 = sphi %s1328_s16, %s1640_s16   ;;  %s1280_s15 = sphi %s1326_s15, %s1639_s15  }
   0x4   : > { %p27_p0 = scmp.ge.s32.totalorder %s26_s20, 4  ;;  %p1051_p1 = scmp.ge.s32.totalorder %s1296_s19, 1 }
   0x5   : > { %p246_p2 = scmp.lt.s32.totalorder %s1296_s19, 9 }
   0x6   : > { %s1644_s20 = smov (%p27_p0, %s26_s20), 0  ;;  %s1646_s21 = smov (!%p27_p0, %s33_s21), %s1292_s18 }
   0x7   : > { %p247_p3 = pnand %p1051_p1, %p246_p2  ;;  %p35_p4 = scmp.ge.s32.totalorder %s1646_s21, 2 }
   0x8   : > { %s1359_s22 = sshll.u32 (!%p247_p3), %s1280_s15, 2  ;;  %p314_p5 = scmp.lt.s32.totalorder (!%p247_p3), %s1284_s16, 1 }
   0x9   : > { %s1648_s21 = smov (%p35_p4, %s1646_s21), 0  ;;  %250 = sbr.rel (%p247_p3) target bundleno = 342 (0x156), region = 36 }
   0xa   : > { %p316_p6 = scmp.lt.s32.totalorder (!%p247_p3), %s1359_s22, 17  ;;  %s1194_s27 = sadd.s32 (!%p247_p3), 4, %s1359_s22 }
   0xb   : > { %p1381_p7 = scmp.lt.s32.totalorder (!%p247_p3), %s1194_s27, 17  ;;  %s1298_s7 = smov (!%p247_p3), 96  }
   0xc   : > { %s1299_s8 = smov (!%p247_p3), 64   ;;  %s1300_s10 = smov (!%p247_p3), 32  }
   0xe   : > { %s1650_s16 = smov (!%p314_p5, %s1284_s16), 1  ;;  %vm472_vm0 = vcmask 1046528   ;;  %s1652_s27 = smov (!%p1381_p7, %s1194_s27), 17  ;;  %vm415_vm1 = vsmask.f32 7424  ;;  %vm571_vm2 = vcmask 261120  }
   0xf   : > { %s317_s23 = scalar_select %p316_p6, %s1359_s22, 17  ;;  %vm580_vm3 = vcmask 523264   ;;  %vm589_vm4 = vcmask 785408  }
  0x10   : > { %s1212_s24 = smul.u32 54, %s1650_s16 }
  0x11   : > { %s1211_s25 = smul.u32 3, %s317_s23 }
  0x12   : > { %s1213_s9 = smul.u32 3, %s1652_s27 }
  0x13   : > { %s320_s26 = sadd.s32 %s1212_s24, %s1211_s25  ;;  %s1058_s25 = sshll.u32 %s1650_s16, 5 }
  0x14   : > { %s1053_s28 = sshll.u32 %s320_s26, 2  ;;  %s338_s11 = sadd.s32 %s1213_s9, %s1212_s24 }
  0x15   : > { %s1372_s5 = scalar_lea.vmem %s1633_s0, %s1053_s28  ;;  %s1056_s12 = sshll.u32 %s338_s11, 2 }
  0x16   : > { %v1375_v0 = vld [vmem:[%s1372_s5 + $0x18] sm:$0xff]  ;;  %v1378_v1 = vld [vmem:[%s1372_s5 + $0xc] sm:$0xff]  ;;  %v370_v2 = vld [vmem:[%s1372_s5 + $0x14] sm:$0x1]  ;;  %s1436_s22 = scalar_lea.vmem %s1634_s1, %s1056_s12  ;;  %s1057_s24 = sshll.u32 %s1280_s15, 3 }
  0x17   : > { %v408_v3 = vunpack.c.l.b16 %v370_v2  ;;  %v373_v4 = vld [vmem:[%s1372_s5 + $0x20] sm:$0x1]  ;;  %v1387_v5 = vld [vmem:[%s1372_s5 + $0x24] sm:$0xff]  ;;  %v376_v6 = vld [vmem:[%s1372_s5 + $0x2c] sm:$0x1]  ;;  %500 = vrot.lane.b32.xlu1 %v1375_v0, %s1298_s7  ;;  %v476_v9 = vrot.slane %v1378_v1, 1 }
  0x18   : > { %v409_v7 = vunpack.c.l.b16 %v373_v4  ;;  %v431_v10 = vshll.u32 %v1378_v1, 16  ;;  %539 = vrot.lane.b32.xlu2 %v1387_v5, %s1299_s8  ;;  %v479_v12 = vrot.slane %v1375_v0, 1  ;;  %v410_v13 = vunpack.c.l.b16 %v376_v6  ;;  %v367_v25 = vld [vmem:[%s1372_s5 + $0x8] sm:$0x1]  ;;  %v1423_v35 = vld [vmem:[%s1372_s5] sm:$0xff]  ;;  %v1465_v6 = vld [vmem:[%s1635_s2 + $0x78] sm:$0xff] }
  0x19   : > { %v412_v8 = vpack.c.b16 %v408_v3, %v408_v3  ;;  %v429_v15 = vshrl.u32 %v1378_v1, 16  ;;  %v443_v24 = vshll.u32 %v1375_v0, 16  ;;  %v453_v26 = vshrl.u32 %v1387_v5, 16  ;;  %v379_v45 = vld [vmem:[%s1436_s22 + $0x8] sm:$0x1]  ;;  %v1173_v54 = vld [vmem:[%s1436_s22] sm:$0xff]  ;;  %1203 = vmatpush.bf16.msra.mxu1 %v1465_v6 }
  0x1a   : > { %v413_v11 = vpack.c.b16 %v409_v7, %v409_v7  ;;  %v433_v16 = vrot.slane %v431_v10, 1  ;;  %v414_v21 = vpack.c.b16 %v410_v13, %v410_v13  ;;  %v455_v27 = vshll.u32 %v1387_v5, 16  ;;  %v1182_v7 = vld [vmem:[%s1635_s2 + $0x38] sm:$0xff]  ;;  %v382_v10 = vld [vmem:[%s1436_s22 + $0x14] sm:$0x1]  ;;  %p354_p8 = scmp.lt.s32.totalorder %s1057_s24, 31 }
  0x1b   : > { %v477_v14 = vrot.slane %v412_v8, 1  ;;  %v436_v17 = vshll.u32 %v412_v8, 16  ;;  %v441_v29 = vshrl.u32 %v1375_v0, 16  ;;  %v445_v33 = vrot.slane %v443_v24, 1  ;;  %v1476_v8 = vld [vmem:[%s1635_s2 + $0x70] sm:$0xff]  ;;  %1195 = vmatpush.bf16.msra.mxu3 %v1182_v7  ;;  %794 = vmatpush.bf16.msra.mxu0 %v1182_v7 }
  0x1c   : > { %v480_v18 = vrot.slane %v413_v11, 1  ;;  %v434_v22 = vor.u32 %v433_v16, %v429_v15  ;;  %v460_v28 = vshll.u32 %v414_v21, 16  ;;  %v457_v30 = vrot.slane %v455_v27, 1  ;;  %v1187_v15 = vld [vmem:[%s1635_s2 + $0x60] sm:$0xff]  ;;  %s1654_s24 = smov (!%p354_p8, %s1057_s24), 31 }
  0x1d   : > { %v1401_v19 = vsel %vm472_vm0, %v476_v9, %v477_v14  ;;  %v438_v23 = vrot.slane %v436_v17, 1  ;;  %v448_v34 = vshll.u32 %v413_v11, 16  ;;  %v407_v36 = vunpack.c.l.b16 %v367_v25  ;;  %v1181_v9 = vld [vmem:[%s1635_s2 + $0x30] sm:$0xff]  ;;  %1204 = vmatpush.bf16.msra.mxu1 %v1476_v8  ;;  %v1488_v11 = vld [vmem:[%s1635_s2 + $0x68] sm:$0xff] }
  0x1e   : > { %487 = vrot.lane.b32.xlu0 %v1401_v19, %s1299_s8  ;;  %v1406_v20 = vsel %vm472_vm0, %v479_v12, %v480_v18  ;;  %v462_v31 = vrot.slane %v460_v28, 1  ;;  %v458_v37 = vor.u32 %v457_v30, %v453_v26  ;;  %v446_v39 = vor.u32 %v445_v33, %v441_v29  ;;  %v1180_v12 = vld [vmem:[%s1635_s2 + $0x28] sm:$0xff]  ;;  %v1186_v29 = vld [vmem:[%s1635_s2 + $0x58] sm:$0xff]  ;;  %v1191_v33 = vld [vmem:[%s1635_s2 + $0x80] sm:$0xff] }
  0x1f   : > { %526 = vrot.lane.b32.xlu1 %v1406_v20, %s1300_s10  ;;  %v1420_v32 = vsel %vm415_vm1, %v434_v22, %v438_v23  ;;  %v450_v40 = vrot.slane %v448_v34, 1  ;;  %v411_v41 = vpack.c.b16 %v407_v36, %v407_v36  ;;  %v419_v42 = vshll.u32 %v1423_v35, 16  ;;  %1196 = vmatpush.bf16.msra.mxu3 %v1181_v9  ;;  %v1497_v14 = vld [vmem:[%s1436_s22 + $0xc] sm:$0xff]  ;;  %v1178_v34 = vld [vmem:[%s1635_s2 + $0x18] sm:$0xff] }
  0x20   : > { %502 = vrot.lane.b32.xlu2 %v1387_v5, %s1298_s7  ;;  %v1428_v38 = vsel %vm415_vm1, %v458_v37, %v462_v31  ;;  %v482_v43 = vrot.slane %v1387_v5, 1  ;;  %v483_v44 = vrot.slane %v414_v21, 1  ;;  %v417_v47 = vshrl.u32 %v1423_v35, 16  ;;  %795 = vmatpush.bf16.msra.mxu0 %v1181_v9  ;;  %v1192_v30 = vld [vmem:[%s1635_s2 + $0x88] sm:$0xff]  ;;  %v1179_v31 = vld [vmem:[%s1635_s2 + $0x20] sm:$0xff]  ;;  %v1177_v37 = vld [vmem:[%s1635_s2 + $0x10] sm:$0xff] }
  0x21   : > { %v1443_v46 = vsel %vm415_vm1, %v446_v39, %v450_v40  ;;  %v421_v48 = vrot.slane %v419_v42, 1  ;;  %v424_v49 = vshll.u32 %v411_v41, 16  ;;  %v507_v50 = vunpack.c.l.b16 %v379_v45  ;;  %1205 = vmatpush.bf16.msra.mxu1 %v1488_v11  ;;  %858 = vmatpush.bf16.msra.mxu2 %v1192_v30  ;;  %v1184_v36 = vld [vmem:[%s1635_s2 + $0x48] sm:$0xff]  ;;  %v1183_v39 = vld [vmem:[%s1635_s2 + $0x40] sm:$0xff] }
  0x22   : > { %v473_v51 = vrot.slane %v1423_v35, 1  ;;  %v474_v52 = vrot.slane %v411_v41, 1  ;;  %v1448_v53 = vsel %vm472_vm0, %v482_v43, %v483_v44  ;;  %v512_v59 = vshll.u32 %v1173_v54, 16  ;;  %v1176_v40 = vld [vmem:[%s1635_s2 + $0x8] sm:$0xff] }
  0x23   : > { %v422_v56 = vor.u32 %v421_v48, %v417_v47  ;;  %v426_v57 = vrot.slane %v424_v49, 1  ;;  %v508_v58 = vpack.c.b16 %v507_v50, %v507_v50  ;;  %v510_v60 = vshrl.u32 %v1173_v54, 16  ;;  %1197 = vmatpush.bf16.msra.mxu3 %v1180_v12 }
  0x24   : > { %v475_v55 = vsel %vm472_vm0, %v473_v51, %v474_v52  ;;  %v514_v61 = vrot.slane %v512_v59, 1  ;;  %v546_v13 = vunpack.c.l.b16 %v382_v10  ;;  %v521_v16 = vrot.slane %v1173_v54, 1  ;;  %796 = vmatpush.bf16.msra.mxu0 %v1180_v12 }
  0x25   : > { %v517_v62 = vshll.u32 %v508_v58, 16  ;;  %v427_v63 = vsel %vm415_vm1, %v422_v56, %v426_v57  ;;  %v522_v17 = vrot.slane %v508_v58, 1  ;;  %v551_v21 = vshll.u32 %v1497_v14, 16  ;;  %1206 = vmatpush.bf16.msra.mxu1 %v1187_v15  ;;  %859 = vmatpush.bf16.msra.mxu2 %v1191_v33 }
  0x26   : > { %466 = vrot.lane.b32.xlu0 %v1420_v32, %s1300_s10  ;;  %v515_v2 = vor.u32 %v514_v61, %v510_v60  ;;  %v1504_v18 = vpack.c.b16 %v546_v13, %v546_v13  ;;  %v549_v23 = vshrl.u32 %v1497_v14, 16  ;;  %v568_v56 = vrot.slane %v1497_v14, 1 }
  0x27   : > { %489 = vrot.lane.b32.xlu1 %v1406_v20, %s1299_s8  ;;  %v519_v3 = vrot.slane %v517_v62, 1  ;;  %v523_v22 = vsel %vm472_vm0, %v521_v16, %v522_v17  ;;  %v553_v24 = vrot.slane %v551_v21, 1  ;;  %1198 = vmatpush.bf16.msra.mxu3 %v1179_v31 }
  0x28   : > { %562 = vrot.lane.b32.xlu2 %v1428_v38, %s1298_s7  ;;  %v556_v25 = vshll.u32 %v1504_v18, 16  ;;  %797 = vmatpush.bf16.msra.mxu0 %v1179_v31  ;;  %v1257_v31 = vld [vmem:[%s1636_s3] ss:$0 sm:$0xff] }
  0x29   : > { %v1460_v4 = vsel %vm415_vm1, %v515_v2, %v519_v3  ;;  %v554_v26 = vor.u32 %v553_v24, %v549_v23  ;;  %1207 = vmatpush.bf16.msra.mxu1 %v1186_v29  ;;  %1156 = vmatmul.msk.bf16.vlgmr.msra.gmra.mxu2 %vm571_vm2, %v1406_v20  ;;  %v1175_v20 = vld [vmem:[%s1635_s2] sm:$0xff] }
  0x2a   : > { %v558_v27 = vrot.slane %v556_v25, 1 }
  0x2b   : > { %1199 = vmatpush.bf16.msra.mxu3 %v1178_v34 }
  0x2c   : > { %v559_v28 = vsel %vm415_vm1, %v554_v26, %v558_v27  ;;  %798 = vmatpush.bf16.msra.mxu0 %v1178_v34 }
  0x2e   : > { %468 = vrot.lane.b32.xlu0 %v1443_v46, %s1300_s10 }
  0x2f   : > { %528 = vrot.lane.b32.xlu1 %v1448_v53, %s1300_s10  ;;  %1200 = vmatpush.bf16.msra.mxu3 %v1177_v37 }
  0x30   : > { %485 = vrot.lane.b32.xlu2 %v475_v55, %s1299_s8  ;;  %799 = vmatpush.bf16.msra.mxu0 %v1177_v37 }
  0x33   : > { %1201 = vmatpush.bf16.msra.mxu3 %v1176_v40 }
  0x34   : > { %800 = vmatpush.bf16.msra.mxu0 %v1176_v40 }
  0x36   : > { %464 = vrot.lane.b32.xlu0 %v427_v63, %s1300_s10 }
  0x37   : > { %498 = vrot.lane.b32.xlu1 %v1378_v1, %s1298_s7  ;;  %1202 = vmatpush.bf16.msra.mxu3 %v1175_v20 }
  0x38   : > { %564 = vrot.lane.b32.xlu2 %v1460_v4, %s1298_s7  ;;  %801 = vmatpush.bf16.msra.mxu0 %v1175_v20 }
  0x39   : > { %1157 = vmatmul.msk.bf16.gmra.mxu2 %vm571_vm2, %v1448_v53 }
  0x3c   : > { %823 = vmatpush.bf16.msrb.mxu0 %v1465_v6 }
  0x3e   : > { %541 = vrot.lane.b32.xlu0 %v1173_v54, %s1299_s8 }
  0x3f   : > { %491 = vrot.lane.b32.xlu1 %v1448_v53, %s1299_s8 }
  0x40   : > { %504 = vrot.lane.b32.xlu2 %v1173_v54, %s1298_s7  ;;  %824 = vmatpush.bf16.msrb.mxu0 %v1476_v8 }
  0x44   : > { %825 = vmatpush.bf16.msrb.mxu0 %v1488_v11 }
  0x46   : > { %470 = vrot.lane.b32.xlu0 %v1428_v38, %s1300_s10 }
  0x47   : > { %530 = vrot.lane.b32.xlu1 %v523_v22, %s1300_s10 }
  0x48   : > { %537 = vrot.lane.b32.xlu2 %v1375_v0, %s1299_s8  ;;  %826 = vmatpush.bf16.msrb.mxu0 %v1187_v15 }
  0x49   : > { %1158 = vmatmul.msk.bf16.gmra.mxu2 %vm571_vm2, %v523_v22 }
  0x4c   : > { %827 = vmatpush.bf16.msrb.mxu0 %v1186_v29 }
  0x4e   : > { %524 = vrot.lane.b32.xlu0 %v1401_v19, %s1300_s10  ;;  %v1185_v19 = vld [vmem:[%s1635_s2 + $0x50] sm:$0xff]  ;;  %s360_s10 = sadd.s32 %s1058_s25, %s1654_s24 }
  0x4f   : > { %560 = vrot.lane.b32.xlu1 %v1443_v46, %s1298_s7  ;;  %1208 = vmatpush.bf16.msra.mxu1 %v1185_v19  ;;  %s1059_s27 = sshll.u32 %s360_s10, 3 }
  0x50   : > { %566 = vrot.lane.b32.xlu2 %v559_v28, %s1298_s7  ;;  %828 = vmatpush.bf16.msrb.mxu0 %v1185_v19  ;;  %s1608_s30 = scalar_lea.vmem %s1637_s4, %s1059_s27 }
  0x53   : > { %1209 = vmatpush.bf16.msra.mxu1 %v1184_v36 }
  0x54   : > { %829 = vmatpush.bf16.msrb.mxu0 %v1184_v36 }
  0x56   : > { %543 = vrot.lane.b32.xlu0 %v1497_v14, %s1299_s8 }
  0x57   : > { %1210 = vmatpush.bf16.msra.mxu1 %v1183_v39 }
  0x58   : > { %830 = vmatpush.bf16.msrb.mxu0 %v1183_v39 }
  0x72   : > { %v540_v41 = vpop.permute.xlu2 %539 }
  0x7a   : > { %v503_v42 = vpop.permute.xlu2 %502 }
  0x82   : > { %v563_v47 = vpop.permute.xlu2 %562 }
  0x89   : > { %v501_v43 = vpop.permute.xlu1 %500 }
  0x8a   : > { %v486_v58 = vpop.permute.xlu2 %485 }
  0x90   : > { %v488_v44 = vpop.permute.xlu0 %487 }
  0x91   : > { %v527_v45 = vpop.permute.xlu1 %526 }
  0x92   : > { %v607_v48 = vsel %vm571_vm2, %v1443_v46, %v527_v45  ;;  %v569_v46 = vrot.slane %v1504_v18, 1  ;;  %v565_v2 = vpop.permute.xlu2 %564 }
  0x93   : > { %v617_v49 = vsel %vm580_vm3, %v607_v48, %v540_v41 }
  0x94   : > { %v626_v50 = vsel %vm589_vm4, %v617_v49, %v563_v47  ;;  %v570_v57 = vsel %vm472_vm0, %v568_v56, %v569_v46 }
  0x95   : > { %836 = vmatmul.bf16.vlgmr.msra.gmra.mxu1 %v626_v50  ;;  %1159 = vmatmul.msk.bf16.gmra.mxu2 %vm571_vm2, %v570_v57 }
  0x98   : > { %v467_v51 = vpop.permute.xlu0 %466 }
  0x99   : > { %v575_v52 = vsel %vm571_vm2, %v1378_v1, %v467_v51  ;;  %v490_v53 = vpop.permute.xlu1 %489 }
  0x9a   : > { %v584_v54 = vsel %vm580_vm3, %v575_v52, %v488_v44 }
  0x9b   : > { %v594_v55 = vsel %vm589_vm4, %v584_v54, %v501_v43 }
  0x9c   : > { %807 = vmatmul.bf16.vlgmr.msra.gmra.mxu3 %v594_v55 }
  0xa0   : > { %v469_v59 = vpop.permute.xlu0 %468 }
  0xa1   : > { %v529_v60 = vpop.permute.xlu1 %528  ;;  %v577_v1 = vsel %vm571_vm2, %v1375_v0, %v469_v59 }
  0xa2   : > { %v586_v62 = vsel %vm580_vm3, %v577_v1, %v490_v53  ;;  %v610_v9 = vsel %vm571_vm2, %v1428_v38, %v529_v60 }
  0xa3   : > { %v597_v7 = vsel %vm589_vm4, %v586_v62, %v503_v42 }
  0xa8   : > { %v465_v61 = vpop.permute.xlu0 %464 }
  0xa9   : > { %v573_v63 = vsel %vm571_vm2, %v1423_v35, %v465_v61  ;;  %v499_v6 = vpop.permute.xlu1 %498  ;;  %v505_v35 = vpop.permute.xlu2 %504 }
  0xaa   : > { %v582_v3 = vsel %vm580_vm3, %v573_v63, %v486_v58 }
  0xab   : > { %v591_v8 = vsel %vm589_vm4, %v582_v3, %v499_v6 }
  0xac   : > { %812 = vmatmul.bf16.gmra.mxu3 %v597_v7  ;;  %802 = vmatmul.bf16.vlgmr.msra.gmra.mxu0 %v591_v8  ;;  %v861_v29 = vpop.f32.mrf.mxu2 }
  0xb0   : > { %v542_v0 = vpop.permute.xlu0 %541 }
  0xb1   : > { %v619_v10 = vsel %vm580_vm3, %v610_v9, %v542_v0  ;;  %v492_v11 = vpop.permute.xlu1 %491  ;;  %v538_v38 = vpop.permute.xlu2 %537 }
  0xb2   : > { %v629_v12 = vsel %vm589_vm4, %v619_v10, %v565_v2 }
  0xb3   : > { %841 = vmatmul.bf16.gmra.mxu1 %v629_v12 }
  0xb4   : > { %v863_v30 = vpop.f32.mrf.mxu2 }
  0xb8   : > { %v471_v13 = vpop.permute.xlu0 %470 }
  0xb9   : > { %v579_v14 = vsel %vm571_vm2, %v1387_v5, %v471_v13  ;;  %v531_v15 = vpop.permute.xlu1 %530  ;;  %v567_v5 = vpop.permute.xlu2 %566 }
  0xba   : > { %v588_v16 = vsel %vm580_vm3, %v579_v14, %v492_v11  ;;  %v613_v25 = vsel %vm571_vm2, %v1460_v4, %v531_v15 }
  0xbb   : > { %v600_v17 = vsel %vm589_vm4, %v588_v16, %v505_v35 }
  0xbc   : > { %817 = vmatmul.bf16.gmra.mxu3 %v600_v17 }
  0xc0   : > { %v525_v18 = vpop.permute.xlu0 %524 }
  0xc1   : > { %v604_v21 = vsel %vm571_vm2, %v1420_v32, %v525_v18  ;;  %v561_v23 = vpop.permute.xlu1 %560  ;;  %v866_v32 = vpop.f32.mrf.mxu2 }
  0xc2   : > { %v615_v22 = vsel %vm580_vm3, %v604_v21, %v538_v38 }
  0xc3   : > { %v623_v24 = vsel %vm589_vm4, %v615_v22, %v561_v23 }
  0xc4   : > { %831 = vmatmul.bf16.vlgmr.msrb.gmra.mxu0 %v623_v24 }
  0xc8   : > { %v544_v26 = vpop.permute.xlu0 %543 }
  0xc9   : > { %v621_v27 = vsel %vm580_vm3, %v613_v25, %v544_v26  ;;  %v868_v37 = vpop.f32.mrf.mxu2 }
  0xca   : > { %v632_v28 = vsel %vm589_vm4, %v621_v27, %v567_v5 }
  0xcb   : > { %846 = vmatmul.bf16.gmra.mxu1 %v632_v28 }
  0xd1   : > { %v871_v43 = vpop.f32.mrf.mxu2 }
  0xd9   : > { %v873_v55 = vpop.f32.mrf.mxu2 }
 0x112   : > { %v837_v19 = vpop.f32.mrf.mxu1 }
 0x118   : > { %v876_v63 = vpop.f32.mrf.mxu2 }
 0x11a   : > { %v839_v40 = vpop.f32.mrf.mxu1 }
 0x11f   : > { %v808_v4 = vpop.f32.mrf.mxu3 }
 0x120   : > { %v809_v33 = vadd.f32 %v1257_v31, %v808_v4  ;;  %v878_v35 = vpop.f32.mrf.mxu2 }
 0x122   : > { %v838_v34 = vadd.f32 %v837_v19, %v809_v33 }
 0x124   : > { %v867_v36 = vadd.f32 %v866_v32, %v838_v34 }
 0x126   : > { %883 = vst [vmem:[%s1608_s30 + $0x10] sm:$0xff] %v867_v36 }
 0x127   : > { %v810_v39 = vpop.f32.mrf.mxu3 }
 0x128   : > { %v811_v20 = vadd.f32 %v1257_v31, %v810_v39 }
 0x129   : > { %v803_v44 = vpop.f32.mrf.mxu0 }
 0x12a   : > { %v840_v41 = vadd.f32 %v839_v40, %v811_v20  ;;  %v804_v57 = vadd.f32 %v1257_v31, %v803_v44 }
 0x12c   : > { %v869_v42 = vadd.f32 %v868_v37, %v840_v41 }
 0x12e   : > { %884 = vst [vmem:[%s1608_s30 + $0x18] sm:$0xff] %v869_v42 }
 0x12f   : > { %v813_v45 = vpop.f32.mrf.mxu3 }
 0x130   : > { %v814_v47 = vadd.f32 %v1257_v31, %v813_v45  ;;  %v842_v48 = vpop.f32.mrf.mxu1 }
 0x131   : > { %v805_v54 = vpop.f32.mrf.mxu0 }
 0x132   : > { %v843_v49 = vadd.f32 %v842_v48, %v814_v47  ;;  %v806_v62 = vadd.f32 %v1257_v31, %v805_v54 }
 0x134   : > { %v872_v50 = vadd.f32 %v871_v43, %v843_v49 }
 0x136   : > { %885 = vst [vmem:[%s1608_s30 + $0x20] sm:$0xff] %v872_v50 }
 0x137   : > { %v815_v51 = vpop.f32.mrf.mxu3 }
 0x138   : > { %v816_v52 = vadd.f32 %v1257_v31, %v815_v51  ;;  %v844_v53 = vpop.f32.mrf.mxu1 }
 0x13a   : > { %v845_v56 = vadd.f32 %v844_v53, %v816_v52 }
 0x13c   : > { %v874_v46 = vadd.f32 %v873_v55, %v845_v56 }
 0x13e   : > { %886 = vst [vmem:[%s1608_s30 + $0x28] sm:$0xff] %v874_v46 }
 0x13f   : > { %v818_v59 = vpop.f32.mrf.mxu3 }
 0x140   : > { %v819_v61 = vadd.f32 %v1257_v31, %v818_v59 }
 0x141   : > { %v832_v58 = vpop.f32.mrf.mxu0 }
 0x142   : > { %v833_v60 = vadd.f32 %v832_v58, %v804_v57 }
 0x144   : > { %v862_v1 = vadd.f32 %v861_v29, %v833_v60 }
 0x146   : > { %881 = vst [vmem:[%s1608_s30] sm:$0xff] %v862_v1 }
 0x147   : > { %v820_v9 = vpop.f32.mrf.mxu3 }
 0x148   : > { %v847_v2 = vpop.f32.mrf.mxu1  ;;  %v821_v10 = vadd.f32 %v1257_v31, %v820_v9 }
 0x149   : > { %v848_v3 = vadd.f32 %v847_v2, %v819_v61  ;;  %v834_v6 = vpop.f32.mrf.mxu0 }
 0x14a   : > { %v835_v7 = vadd.f32 %v834_v6, %v806_v62 }
 0x14b   : > { %v877_v8 = vadd.f32 %v876_v63, %v848_v3 }
 0x14c   : > { %v864_v0 = vadd.f32 %v863_v30, %v835_v7 }
 0x14d   : > { %887 = vst [vmem:[%s1608_s30 + $0x30] sm:$0xff] %v877_v8 }
 0x14e   : > { %882 = vst [vmem:[%s1608_s30 + $0x8] sm:$0xff] %v864_v0 }
 0x150   : > { %v849_v11 = vpop.f32.mrf.mxu1 }
 0x151   : > { %v850_v12 = vadd.f32 %v849_v11, %v821_v10 }
 0x153   : > { %v879_v13 = vadd.f32 %v878_v35, %v850_v12 }
 0x155   : > { %888 = vst [vmem:[%s1608_s30 + $0x38] sm:$0xff] %v879_v13 }
 0x156 PF: > { %s14_s19 = sadd.s32 1, %s1296_s19   ;;  %s1639_s15 = smov %s1288_s17 }
 0x157   : > { %p11_p9 = scmp.ge.s32.totalorder %s14_s19, 10   ;;  %s1640_s16 = smov %s1292_s18 }
 0x158   : > { %s1641_s17 = smov %s1644_s20  ;;  %s1642_s18 = smov %s1648_s21 }
 0x159   :  { %13 = sbr.rel (!%p11_p9) target bundleno = 3 (0x3), region = 75 }

</bundles_post_ra>
